<compile_context>
chip_gen: v7x
topology: tpu7x:2x2x1
jax: 0.10.0
libtpu: 0.0.40
codegen_flags: <defaults>
</compile_context>

<pallas_src>
import functools

import numpy as np
import jax
import jax.numpy as jnp
from jax import lax
from jax.experimental import pallas as pl
from jax.experimental.pallas import tpu as pltpu


_LANE_CHUNK = 256  # cells processed per in-kernel chunk (multiple of 8)


def _round_up(x, m):
    return ((x + m - 1) // m) * m


def _yolo_loss_kernel(pred_ref, tgt_ref, out_ref, acc_ref, *,
                      inv_s, n_cells, inv_n, l_coord, l_noobj,
                      tl, ch, n_chunks):
    """Accumulate the weighted YOLO loss of one (tl, 30) tile of cells.

    pred_ref, tgt_ref : (tl, 30) VMEM tiles, cell-major, caller dtype
    out_ref           : (1, 1) f32 final total loss (written at the last step)
    acc_ref           : (8, ch) f32 scratch; row 0 = running per-lane weighted
                        loss sum (persists across grid steps)
    """
    t = pl.program_id(0)

    @pl.when(t == 0)
    def _init():
        acc_ref[...] = jnp.zeros_like(acc_ref)

    f32 = jnp.float32
    tile_base = t * tl

    @pl.loop(0, n_chunks)
    def _chunk(j):
        off = pl.multiple_of(j * ch, 8)
        base = tile_base + off

        # Skip chunks that lie entirely past the end of the (ragged) last tile.
        @pl.when(base < n_cells)
        def _do():
            # (ch, 30) cell-major chunk -> (30, ch) channel-major rows.
            # The minor-dim swap runs on the XLU, which is otherwise idle here.
            pt = pltpu.einshape("cd->dc",
                                pred_ref[pl.ds(off, ch), :].astype(f32))
            gt = pltpu.einshape("cd->dc",
                                tgt_ref[pl.ds(off, ch), :].astype(f32))

            def pr(r):
                return pt[r:r + 1, :]          # lane-dense (1, ch) channel row

            def tr(r):
                return gt[r:r + 1, :]

            # Ragged-tail / garbage lanes are excluded here; every term below
            # is gated by (obj | noobj), which both include `valid`.
            lane = lax.broadcasted_iota(jnp.int32, (1, ch), 1)
            valid = (base + lane) < n_cells

            conf_t = tr(4)
            obj = (conf_t > 0.0) & valid
            noobj = (conf_t == 0.0) & valid

            # ---- class + no-object losses (dense block math on rows 8..29) --
            dblk = pt[8:30, :] - gt[8:30, :]
            blk_sum = jnp.sum(dblk * dblk, axis=0, keepdims=True)   # (1, ch)
            d8 = pr(8) - tr(8)
            d9 = pr(9) - tr(9)
            cls_vec = jnp.where(obj, blk_sum - d8 * d8 - d9 * d9, 0.0)
            d4 = pr(4) - tr(4)
            noo_vec = jnp.where(noobj, d4 * d4 + d9 * d9, 0.0)

            # ---- per-cell "diagonal" IoU of target box b vs pred box b ------
            def diag_iou(o):
                px, py, pw, ph = pr(o), pr(o + 1), pr(o + 2), pr(o + 3)
                tx, ty, tw, th = tr(o), tr(o + 1), tr(o + 2), tr(o + 3)
                px1 = px * inv_s - 0.5 * pw
                px2 = px * inv_s + 0.5 * pw
                py1 = py * inv_s - 0.5 * ph
                py2 = py * inv_s + 0.5 * ph
                tx1 = tx * inv_s - 0.5 * tw
                tx2 = tx * inv_s + 0.5 * tw
                ty1 = ty * inv_s - 0.5 * th
                ty2 = ty * inv_s + 0.5 * th
                iw = jnp.maximum(jnp.minimum(tx2, px2) - jnp.maximum(tx1, px1),
                                 0.0)
                ih = jnp.maximum(jnp.minimum(ty2, py2) - jnp.maximum(ty1, py1),
                                 0.0)
                inter = iw * ih
                area_t = (tx2 - tx1) * (ty2 - ty1)
                area_p = (px2 - px1) * (py2 - py1)
                denom = area_t + area_p - inter
                # EUP approx reciprocal; garbage on non-object lanes is masked.
                iou = inter * pl.reciprocal(denom, approx=True)
                return iou, inter, denom

            iou0, inter0, den0 = diag_iou(0)
            iou1, inter1, den1 = diag_iou(5)
            # Responsible box: box0 iff iou0 > iou1 (strict).  Cross-multiplied
            # compare (denoms > 0 for object cells) so the selection does not
            # depend on the approximate reciprocal.
            sel0 = inter0 * den1 > inter1 * den0
            resp_iou = jnp.where(sel0, iou0, iou1)

            def pick_p(k):
                return jnp.where(sel0, pr(k), pr(5 + k))

            def pick_t(k):
                return jnp.where(sel0, tr(k), tr(5 + k))

            # ---- containing-confidence + regression losses ------------------
            dc = pick_p(4) - resp_iou
            con_vec = jnp.where(obj, dc * dc, 0.0)

            dx = pick_p(0) - pick_t(0)
            dy = pick_p(1) - pick_t(1)
            # where() before sqrt so garbage w/h of non-object lanes can't
            # produce NaNs that survive the final where().
            dw = (jnp.sqrt(jnp.where(obj, pick_p(2), 0.0))
                  - jnp.sqrt(jnp.where(obj, pick_t(2), 0.0)))
            dh = (jnp.sqrt(jnp.where(obj, pick_p(3), 0.0))
                  - jnp.sqrt(jnp.where(obj, pick_t(3), 0.0)))
            reg_vec = jnp.where(obj, dx * dx + dy * dy + dw * dw + dh * dh, 0.0)

            # ---- weighted lane-wise accumulation ----------------------------
            acc_ref[0:1, :] += (l_coord * reg_vec + con_vec
                                + l_noobj * noo_vec + cls_vec)

    @pl.when(t == pl.num_programs(0) - 1)
    def _finalize():
        total = jnp.sum(acc_ref[0:1, :], axis=1, keepdims=True)   # (1, 1)
        out_ref[...] = (total * inv_n).astype(out_ref.dtype)


def yolo_loss(pred_tensor, target_tensor, *, S, B, l_coord, l_noobj,
              tile_cells=8192):
    """Pallas implementation of YoloLoss.forward.

    pred_tensor, target_tensor : (N, S, S, B*5 + 20 = 30)
    Returns a scalar f32 total loss.
    """
    assert B == 2, "kernel implements the standard B=2 YOLO head"
    N, S1, S2, D = pred_tensor.shape
    assert S1 == S and S2 == S and D == 30

    C = N * S * S

    # Natural cell-major layout; reshape is a free view (no host transpose,
    # no padding copy).  The in-kernel lane mask handles the ragged tail.
    p2 = pred_tensor.reshape(C, 30)
    t2 = target_tensor.reshape(C, 30)

    if C < 8:
        ch = C
        tl = C
    else:
        ch = min(_LANE_CHUNK, (C // 8) * 8)                    # multiple of 8
        tl = min(_round_up(tile_cells, ch), (C // ch) * ch)    # multiple of ch
    n_chunks = tl // ch
    n_tiles = pl.cdiv(C, tl)

    kernel = functools.partial(
        _yolo_loss_kernel,
        inv_s=1.0 / float(S), n_cells=C, inv_n=1.0 / float(N),
        l_coord=float(l_coord), l_noobj=float(l_noobj),
        tl=tl, ch=ch, n_chunks=n_chunks)

    out = pl.pallas_call(
        kernel,
        out_shape=jax.ShapeDtypeStruct((1, 1), jnp.float32),
        grid=(n_tiles,),
        in_specs=[
            pl.BlockSpec((tl, 30), lambda i: (i, 0)),
            pl.BlockSpec((tl, 30), lambda i: (i, 0)),
        ],
        out_specs=pl.BlockSpec((1, 1), lambda i: (0, 0)),
        scratch_shapes=[pltpu.VMEM((8, ch), jnp.float32)],
        compiler_params=pltpu.CompilerParams(
            dimension_semantics=("arbitrary",)),
    )(p2, t2)

    return out[0, 0]


def _ref_yolo_loss_numpy(pred, target, S, l_coord, l_noobj):
    """Direct numpy transcription of the PyTorch forward (for verification)."""
    pred = np.asarray(pred, np.float32)
    target = np.asarray(target, np.float32)
    N = pred.shape[0]

    conf = target[..., 4]
    obj_mask = conf > 0
    noobj_mask = conf == 0

    co_pred = pred[obj_mask].reshape(-1, 30)
    co_tgt = target[obj_mask].reshape(-1, 30)
    bb_pred = co_pred[:, :10].reshape(-1, 5)
    bb_tgt = co_tgt[:, :10].reshape(-1, 5)
    class_loss = float(np.sum((co_pred[:, 10:] - co_tgt[:, 10:]) ** 2))

    no_pred = pred[noobj_mask]
    no_tgt = target[noobj_mask]
    no_object_loss = float(np.sum((no_pred[:, 4] - no_tgt[:, 4]) ** 2)
                           + np.sum((no_pred[:, 9] - no_tgt[:, 9]) ** 2))

    def corners(b):
        c = np.zeros((b.shape[0], 4), np.float32)
        c[:, 0:2] = b[:, 0:2] / S - 0.5 * b[:, 2:4]
        c[:, 2:4] = b[:, 0:2] / S + 0.5 * b[:, 2:4]
        return c

    ct = corners(bb_tgt)
    cp = corners(bb_pred)
    lt = np.maximum(ct[:, :2], cp[:, :2])
    rb = np.minimum(ct[:, 2:], cp[:, 2:])
    wh = np.clip(rb - lt, 0.0, None)
    inter = wh[:, 0] * wh[:, 1]
    at = (ct[:, 2] - ct[:, 0]) * (ct[:, 3] - ct[:, 1])
    ap = (cp[:, 2] - cp[:, 0]) * (cp[:, 3] - cp[:, 1])
    iou = inter / (at + ap - inter)  # diagonal of the full IoU matrix

    reg_loss = 0.0
    contain_loss = 0.0
    for i in range(0, bb_tgt.shape[0], 2):
        idx = i if iou[i] > iou[i + 1] else i + 1
        bp, bt = bb_pred[idx], bb_tgt[idx]
        contain_loss += (bp[4] - iou[idx]) ** 2
        reg_loss += ((bp[0] - bt[0]) ** 2 + (bp[1] - bt[1]) ** 2
                     + (np.sqrt(bp[3]) - np.sqrt(bt[3])) ** 2
                     + (np.sqrt(bp[2]) - np.sqrt(bt[2])) ** 2)

    return (l_coord * reg_loss + contain_loss
            + l_noobj * no_object_loss + class_loss) / N


if __name__ == "__main__":
    S, B = 7, 2
    l_coord, l_noobj = 5.0, 0.5

    # N=2 exercises the tiny single-tile path; N=26 exercises the multi-tile,
    # multi-chunk path with a ragged last tile (C = 1274 cells).
    for N in (2, 26):
        key = jax.random.PRNGKey(0)
        k1, k2, k3 = jax.random.split(key, 3)

        pred = jax.random.uniform(k1, (N, S, S, 30), jnp.float32,
                                  minval=0.05, maxval=0.95)
        target = jax.random.uniform(k2, (N, S, S, 30), jnp.float32,
                                    minval=0.05, maxval=0.95)
        # object-present confidence is 0/1 per cell (both boxes share it)
        obj_conf = (jax.random.uniform(k3, (N, S, S)) < 0.3).astype(jnp.float32)
        target = target.at[..., 4].set(obj_conf)
        target = target.at[..., 9].set(obj_conf)

        total = yolo_loss(pred, target, S=S, B=B,
                          l_coord=l_coord, l_noobj=l_noobj)
        total = jax.block_until_ready(total)

        ref = _ref_yolo_loss_numpy(np.array(pred), np.array(target),
                                   S, l_coord, l_noobj)

        assert np.isfinite(float(total)), "kernel produced non-finite loss"
        np.testing.assert_allclose(float(total), ref, rtol=1e-3, atol=1e-3)

    print("KERNEL_OK")
</pallas_src>

<mosaic_0001>
module attributes {stable_mosaic.version = 11 : i64} {
  func.func @_yolo_loss_kernel(%arg0: i32, %arg1: memref<96x30xf32, #tpu.memory_space<vmem>>, %arg2: memref<96x30xf32, #tpu.memory_space<vmem>>, %arg3: memref<1x1xf32, #tpu.memory_space<vmem>>, %arg4: memref<8x96xf32, #tpu.memory_space<vmem>>) attributes {dimension_semantics = [#tpu.dimension_semantics<arbitrary>], iteration_bounds = array<i64: 2>, scalar_prefetch = 0 : i64, scratch_operands = 1 : i64, tpu.core_type = #tpu.core_type<tc>, window_params = [{transform_indices = @transform_0, window_bounds = array<i64: 96, 30>}, {transform_indices = @transform_1, window_bounds = array<i64: 96, 30>}, {pipeline_mode = #tpu.pipeline_mode<synchronous>, transform_indices = @transform_2, window_bounds = array<i64: 1, 1>}]} {
    %c0_i32 = arith.constant 0 : i32
    %0 = arith.cmpi eq, %arg0, %c0_i32 : i32
    %1 = arith.extui %0 : i1 to i32
    %c0_i32_0 = arith.constant 0 : i32
    %2 = arith.cmpi ne, %1, %c0_i32_0 : i32
    scf.if %2 {
      %cst = arith.constant 0.000000e+00 : f32
      %15 = vector.broadcast %cst : f32 to vector<8x96xf32>
      %c0 = arith.constant 0 : index
      %c0_8 = arith.constant 0 : index
      %16 = vector.load %arg4[%c0, %c0_8] : memref<8x96xf32, #tpu.memory_space<vmem>>, vector<8x96xf32>
      tpu.vector_store %arg4[%c0, %c0_8], %15 {strides = array<i32>} : memref<8x96xf32, #tpu.memory_space<vmem>>, vector<8x96xf32>,
    } else {
    }
    %c96_i32 = arith.constant 96 : i32
    %3 = arith.muli %arg0, %c96_i32 : i32
    %c0_i32_1 = arith.constant 0 : i32
    %c1_i32 = arith.constant 1 : i32
    %4 = arith.muli %c0_i32_1, %c1_i32 : i32
    %c0_i32_2 = arith.constant 0 : i32
    %5 = arith.addi %c0_i32_2, %4 : i32
    %c96_i32_3 = arith.constant 96 : i32
    %6 = arith.muli %5, %c96_i32_3 : i32
    %7 = tpu.assume_multiple %6, 8 : i32
    %8 = arith.addi %3, %7 : i32
    %c98_i32 = arith.constant 98 : i32
    %9 = arith.cmpi slt, %8, %c98_i32 : i32
    %10 = arith.extui %9 : i1 to i32
    %c0_i32_4 = arith.constant 0 : i32
    %11 = arith.cmpi ne, %10, %c0_i32_4 : i32
    scf.if %11 {
      %15 = arith.index_cast %7 : i32 to index
      %c0 = arith.constant 0 : index
      %16 = vector.load %arg1[%15, %c0] : memref<96x30xf32, #tpu.memory_space<vmem>>, vector<96x30xf32>
      %17 = tpu.transpose %16, [1, 0] : vector<96x30xf32> -> vector<30x96xf32>
      %18 = arith.index_cast %7 : i32 to index
      %c0_8 = arith.constant 0 : index
      %19 = vector.load %arg2[%18, %c0_8] : memref<96x30xf32, #tpu.memory_space<vmem>>, vector<96x30xf32>
      %20 = tpu.transpose %19, [1, 0] : vector<96x30xf32> -> vector<30x96xf32>
      %21 = tpu.iota {dimensions = array<i32: 1>} : vector<1x96xi32>
      %22 = vector.broadcast %8 : i32 to vector<1x96xi32>
      %23 = arith.addi %22, %21 : vector<1x96xi32>
      %c98_i32_9 = arith.constant 98 : i32
      %24 = vector.broadcast %c98_i32_9 : i32 to vector<1x96xi32>
      %25 = arith.cmpi slt, %23, %24 : vector<1x96xi32>
      %26 = vector.extract_strided_slice %20 {offsets = [4, 0], sizes = [1, 96], strides = [1, 1]} : vector<30x96xf32> to vector<1x96xf32>
      %cst = arith.constant 0.000000e+00 : f32
      %27 = vector.broadcast %cst : f32 to vector<1x96xf32>
      %28 = arith.cmpf ogt, %26, %27 : vector<1x96xf32>
      %29 = arith.andi %28, %25 : vector<1x96xi1>
      %cst_10 = arith.constant 0.000000e+00 : f32
      %30 = vector.broadcast %cst_10 : f32 to vector<1x96xf32>
      %31 = arith.cmpf oeq, %26, %30 : vector<1x96xf32>
      %32 = arith.andi %31, %25 : vector<1x96xi1>
      %33 = vector.extract_strided_slice %17 {offsets = [8, 0], sizes = [22, 96], strides = [1, 1]} : vector<30x96xf32> to vector<22x96xf32>
      %34 = vector.extract_strided_slice %20 {offsets = [8, 0], sizes = [22, 96], strides = [1, 1]} : vector<30x96xf32> to vector<22x96xf32>
      %35 = arith.subf %33, %34 : vector<22x96xf32>
      %36 = arith.mulf %35, %35 : vector<22x96xf32>
      %cst_11 = arith.constant dense<0.000000e+00> : vector<96xf32>
      %37 = vector.multi_reduction <add>, %36, %cst_11 [0] : vector<22x96xf32> to vector<96xf32>
      %38 = vector.shape_cast %37 : vector<96xf32> to vector<1x96xf32>
      %39 = vector.extract_strided_slice %17 {offsets = [8, 0], sizes = [1, 96], strides = [1, 1]} : vector<30x96xf32> to vector<1x96xf32>
      %40 = vector.extract_strided_slice %20 {offsets = [8, 0], sizes = [1, 96], strides = [1, 1]} : vector<30x96xf32> to vector<1x96xf32>
      %41 = arith.subf %39, %40 : vector<1x96xf32>
      %42 = vector.extract_strided_slice %17 {offsets = [9, 0], sizes = [1, 96], strides = [1, 1]} : vector<30x96xf32> to vector<1x96xf32>
      %43 = vector.extract_strided_slice %20 {offsets = [9, 0], sizes = [1, 96], strides = [1, 1]} : vector<30x96xf32> to vector<1x96xf32>
      %44 = arith.subf %42, %43 : vector<1x96xf32>
      %45 = arith.mulf %41, %41 : vector<1x96xf32>
      %46 = arith.subf %38, %45 : vector<1x96xf32>
      %47 = arith.mulf %44, %44 : vector<1x96xf32>
      %48 = arith.subf %46, %47 : vector<1x96xf32>
      %cst_12 = arith.constant 0.000000e+00 : f32
      %49 = vector.broadcast %cst_12 : f32 to vector<1x96xf32>
      %50 = arith.select %29, %48, %49 : vector<1x96xi1>, vector<1x96xf32>
      %51 = vector.extract_strided_slice %17 {offsets = [4, 0], sizes = [1, 96], strides = [1, 1]} : vector<30x96xf32> to vector<1x96xf32>
      %52 = vector.extract_strided_slice %20 {offsets = [4, 0], sizes = [1, 96], strides = [1, 1]} : vector<30x96xf32> to vector<1x96xf32>
      %53 = arith.subf %51, %52 : vector<1x96xf32>
      %54 = arith.mulf %53, %53 : vector<1x96xf32>
      %55 = arith.mulf %44, %44 : vector<1x96xf32>
      %56 = arith.addf %54, %55 : vector<1x96xf32>
      %cst_13 = arith.constant 0.000000e+00 : f32
      %57 = vector.broadcast %cst_13 : f32 to vector<1x96xf32>
      %58 = arith.select %32, %56, %57 : vector<1x96xi1>, vector<1x96xf32>
      %59 = vector.extract_strided_slice %17 {offsets = [0, 0], sizes = [1, 96], strides = [1, 1]} : vector<30x96xf32> to vector<1x96xf32>
      %60 = vector.extract_strided_slice %17 {offsets = [1, 0], sizes = [1, 96], strides = [1, 1]} : vector<30x96xf32> to vector<1x96xf32>
      %61 = vector.extract_strided_slice %17 {offsets = [2, 0], sizes = [1, 96], strides = [1, 1]} : vector<30x96xf32> to vector<1x96xf32>
      %62 = vector.extract_strided_slice %17 {offsets = [3, 0], sizes = [1, 96], strides = [1, 1]} : vector<30x96xf32> to vector<1x96xf32>
      %63 = vector.extract_strided_slice %20 {offsets = [0, 0], sizes = [1, 96], strides = [1, 1]} : vector<30x96xf32> to vector<1x96xf32>
      %64 = vector.extract_strided_slice %20 {offsets = [1, 0], sizes = [1, 96], strides = [1, 1]} : vector<30x96xf32> to vector<1x96xf32>
      %65 = vector.extract_strided_slice %20 {offsets = [2, 0], sizes = [1, 96], strides = [1, 1]} : vector<30x96xf32> to vector<1x96xf32>
      %66 = vector.extract_strided_slice %20 {offsets = [3, 0], sizes = [1, 96], strides = [1, 1]} : vector<30x96xf32> to vector<1x96xf32>
      %cst_14 = arith.constant 0.142857149 : f32
      %67 = vector.broadcast %cst_14 : f32 to vector<1x96xf32>
      %68 = arith.mulf %59, %67 : vector<1x96xf32>
      %cst_15 = arith.constant 5.000000e-01 : f32
      %69 = vector.broadcast %cst_15 : f32 to vector<1x96xf32>
      %70 = arith.mulf %69, %61 : vector<1x96xf32>
      %71 = arith.subf %68, %70 : vector<1x96xf32>
      %cst_16 = arith.constant 0.142857149 : f32
      %72 = vector.broadcast %cst_16 : f32 to vector<1x96xf32>
      %73 = arith.mulf %59, %72 : vector<1x96xf32>
      %cst_17 = arith.constant 5.000000e-01 : f32
      %74 = vector.broadcast %cst_17 : f32 to vector<1x96xf32>
      %75 = arith.mulf %74, %61 : vector<1x96xf32>
      %76 = arith.addf %73, %75 : vector<1x96xf32>
      %cst_18 = arith.constant 0.142857149 : f32
      %77 = vector.broadcast %cst_18 : f32 to vector<1x96xf32>
      %78 = arith.mulf %60, %77 : vector<1x96xf32>
      %cst_19 = arith.constant 5.000000e-01 : f32
      %79 = vector.broadcast %cst_19 : f32 to vector<1x96xf32>
      %80 = arith.mulf %79, %62 : vector<1x96xf32>
      %81 = arith.subf %78, %80 : vector<1x96xf32>
      %cst_20 = arith.constant 0.142857149 : f32
      %82 = vector.broadcast %cst_20 : f32 to vector<1x96xf32>
      %83 = arith.mulf %60, %82 : vector<1x96xf32>
      %cst_21 = arith.constant 5.000000e-01 : f32
      %84 = vector.broadcast %cst_21 : f32 to vector<1x96xf32>
      %85 = arith.mulf %84, %62 : vector<1x96xf32>
      %86 = arith.addf %83, %85 : vector<1x96xf32>
      %cst_22 = arith.constant 0.142857149 : f32
      %87 = vector.broadcast %cst_22 : f32 to vector<1x96xf32>
      %88 = arith.mulf %63, %87 : vector<1x96xf32>
      %cst_23 = arith.constant 5.000000e-01 : f32
      %89 = vector.broadcast %cst_23 : f32 to vector<1x96xf32>
      %90 = arith.mulf %89, %65 : vector<1x96xf32>
      %91 = arith.subf %88, %90 : vector<1x96xf32>
      %cst_24 = arith.constant 0.142857149 : f32
      %92 = vector.broadcast %cst_24 : f32 to vector<1x96xf32>
      %93 = arith.mulf %63, %92 : vector<1x96xf32>
      %cst_25 = arith.constant 5.000000e-01 : f32
      %94 = vector.broadcast %cst_25 : f32 to vector<1x96xf32>
      %95 = arith.mulf %94, %65 : vector<1x96xf32>
      %96 = arith.addf %93, %95 : vector<1x96xf32>
      %cst_26 = arith.constant 0.142857149 : f32
      %97 = vector.broadcast %cst_26 : f32 to vector<1x96xf32>
      %98 = arith.mulf %64, %97 : vector<1x96xf32>
      %cst_27 = arith.constant 5.000000e-01 : f32
      %99 = vector.broadcast %cst_27 : f32 to vector<1x96xf32>
      %100 = arith.mulf %99, %66 : vector<1x96xf32>
      %101 = arith.subf %98, %100 : vector<1x96xf32>
      %cst_28 = arith.constant 0.142857149 : f32
      %102 = vector.broadcast %cst_28 : f32 to vector<1x96xf32>
      %103 = arith.mulf %64, %102 : vector<1x96xf32>
      %cst_29 = arith.constant 5.000000e-01 : f32
      %104 = vector.broadcast %cst_29 : f32 to vector<1x96xf32>
      %105 = arith.mulf %104, %66 : vector<1x96xf32>
      %106 = arith.addf %103, %105 : vector<1x96xf32>
      %107 = arith.minimumf %96, %76 : vector<1x96xf32>
      %108 = arith.maximumf %91, %71 : vector<1x96xf32>
      %109 = arith.subf %107, %108 : vector<1x96xf32>
      %cst_30 = arith.constant 0.000000e+00 : f32
      %110 = vector.broadcast %cst_30 : f32 to vector<1x96xf32>
      %111 = arith.maximumf %109, %110 : vector<1x96xf32>
      %112 = arith.minimumf %106, %86 : vector<1x96xf32>
      %113 = arith.maximumf %101, %81 : vector<1x96xf32>
      %114 = arith.subf %112, %113 : vector<1x96xf32>
      %cst_31 = arith.constant 0.000000e+00 : f32
      %115 = vector.broadcast %cst_31 : f32 to vector<1x96xf32>
      %116 = arith.maximumf %114, %115 : vector<1x96xf32>
      %117 = arith.mulf %111, %116 : vector<1x96xf32>
      %118 = arith.subf %96, %91 : vector<1x96xf32>
      %119 = arith.subf %106, %101 : vector<1x96xf32>
      %120 = arith.mulf %118, %119 : vector<1x96xf32>
      %121 = arith.subf %76, %71 : vector<1x96xf32>
      %122 = arith.subf %86, %81 : vector<1x96xf32>
      %123 = arith.mulf %121, %122 : vector<1x96xf32>
      %124 = arith.addf %120, %123 : vector<1x96xf32>
      %125 = arith.subf %124, %117 : vector<1x96xf32>
      %126 = tpu.reciprocal %125 {approx = true} : vector<1x96xf32> -> vector<1x96xf32>
      %127 = arith.mulf %117, %126 : vector<1x96xf32>
      %128 = vector.extract_strided_slice %17 {offsets = [5, 0], sizes = [1, 96], strides = [1, 1]} : vector<30x96xf32> to vector<1x96xf32>
      %129 = vector.extract_strided_slice %17 {offsets = [6, 0], sizes = [1, 96], strides = [1, 1]} : vector<30x96xf32> to vector<1x96xf32>
      %130 = vector.extract_strided_slice %17 {offsets = [7, 0], sizes = [1, 96], strides = [1, 1]} : vector<30x96xf32> to vector<1x96xf32>
      %131 = vector.extract_strided_slice %17 {offsets = [8, 0], sizes = [1, 96], strides = [1, 1]} : vector<30x96xf32> to vector<1x96xf32>
      %132 = vector.extract_strided_slice %20 {offsets = [5, 0], sizes = [1, 96], strides = [1, 1]} : vector<30x96xf32> to vector<1x96xf32>
      %133 = vector.extract_strided_slice %20 {offsets = [6, 0], sizes = [1, 96], strides = [1, 1]} : vector<30x96xf32> to vector<1x96xf32>
      %134 = vector.extract_strided_slice %20 {offsets = [7, 0], sizes = [1, 96], strides = [1, 1]} : vector<30x96xf32> to vector<1x96xf32>
      %135 = vector.extract_strided_slice %20 {offsets = [8, 0], sizes = [1, 96], strides = [1, 1]} : vector<30x96xf32> to vector<1x96xf32>
      %cst_32 = arith.constant 0.142857149 : f32
      %136 = vector.broadcast %cst_32 : f32 to vector<1x96xf32>
      %137 = arith.mulf %128, %136 : vector<1x96xf32>
      %cst_33 = arith.constant 5.000000e-01 : f32
      %138 = vector.broadcast %cst_33 : f32 to vector<1x96xf32>
      %139 = arith.mulf %138, %130 : vector<1x96xf32>
      %140 = arith.subf %137, %139 : vector<1x96xf32>
      %cst_34 = arith.constant 0.142857149 : f32
      %141 = vector.broadcast %cst_34 : f32 to vector<1x96xf32>
      %142 = arith.mulf %128, %141 : vector<1x96xf32>
      %cst_35 = arith.constant 5.000000e-01 : f32
      %143 = vector.broadcast %cst_35 : f32 to vector<1x96xf32>
      %144 = arith.mulf %143, %130 : vector<1x96xf32>
      %145 = arith.addf %142, %144 : vector<1x96xf32>
      %cst_36 = arith.constant 0.142857149 : f32
      %146 = vector.broadcast %cst_36 : f32 to vector<1x96xf32>
      %147 = arith.mulf %129, %146 : vector<1x96xf32>
      %cst_37 = arith.constant 5.000000e-01 : f32
      %148 = vector.broadcast %cst_37 : f32 to vector<1x96xf32>
      %149 = arith.mulf %148, %131 : vector<1x96xf32>
      %150 = arith.subf %147, %149 : vector<1x96xf32>
      %cst_38 = arith.constant 0.142857149 : f32
      %151 = vector.broadcast %cst_38 : f32 to vector<1x96xf32>
      %152 = arith.mulf %129, %151 : vector<1x96xf32>
      %cst_39 = arith.constant 5.000000e-01 : f32
      %153 = vector.broadcast %cst_39 : f32 to vector<1x96xf32>
      %154 = arith.mulf %153, %131 : vector<1x96xf32>
      %155 = arith.addf %152, %154 : vector<1x96xf32>
      %cst_40 = arith.constant 0.142857149 : f32
      %156 = vector.broadcast %cst_40 : f32 to vector<1x96xf32>
      %157 = arith.mulf %132, %156 : vector<1x96xf32>
      %cst_41 = arith.constant 5.000000e-01 : f32
      %158 = vector.broadcast %cst_41 : f32 to vector<1x96xf32>
      %159 = arith.mulf %158, %134 : vector<1x96xf32>
      %160 = arith.subf %157, %159 : vector<1x96xf32>
      %cst_42 = arith.constant 0.142857149 : f32
      %161 = vector.broadcast %cst_42 : f32 to vector<1x96xf32>
      %162 = arith.mulf %132, %161 : vector<1x96xf32>
      %cst_43 = arith.constant 5.000000e-01 : f32
      %163 = vector.broadcast %cst_43 : f32 to vector<1x96xf32>
      %164 = arith.mulf %163, %134 : vector<1x96xf32>
      %165 = arith.addf %162, %164 : vector<1x96xf32>
      %cst_44 = arith.constant 0.142857149 : f32
      %166 = vector.broadcast %cst_44 : f32 to vector<1x96xf32>
      %167 = arith.mulf %133, %166 : vector<1x96xf32>
      %cst_45 = arith.constant 5.000000e-01 : f32
      %168 = vector.broadcast %cst_45 : f32 to vector<1x96xf32>
      %169 = arith.mulf %168, %135 : vector<1x96xf32>
      %170 = arith.subf %167, %169 : vector<1x96xf32>
      %cst_46 = arith.constant 0.142857149 : f32
      %171 = vector.broadcast %cst_46 : f32 to vector<1x96xf32>
      %172 = arith.mulf %133, %171 : vector<1x96xf32>
      %cst_47 = arith.constant 5.000000e-01 : f32
      %173 = vector.broadcast %cst_47 : f32 to vector<1x96xf32>
      %174 = arith.mulf %173, %135 : vector<1x96xf32>
      %175 = arith.addf %172, %174 : vector<1x96xf32>
      %176 = arith.minimumf %165, %145 : vector<1x96xf32>
      %177 = arith.maximumf %160, %140 : vector<1x96xf32>
      %178 = arith.subf %176, %177 : vector<1x96xf32>
      %cst_48 = arith.constant 0.000000e+00 : f32
      %179 = vector.broadcast %cst_48 : f32 to vector<1x96xf32>
      %180 = arith.maximumf %178, %179 : vector<1x96xf32>
      %181 = arith.minimumf %175, %155 : vector<1x96xf32>
      %182 = arith.maximumf %170, %150 : vector<1x96xf32>
      %183 = arith.subf %181, %182 : vector<1x96xf32>
      %cst_49 = arith.constant 0.000000e+00 : f32
      %184 = vector.broadcast %cst_49 : f32 to vector<1x96xf32>
      %185 = arith.maximumf %183, %184 : vector<1x96xf32>
      %186 = arith.mulf %180, %185 : vector<1x96xf32>
      %187 = arith.subf %165, %160 : vector<1x96xf32>
      %188 = arith.subf %175, %170 : vector<1x96xf32>
      %189 = arith.mulf %187, %188 : vector<1x96xf32>
      %190 = arith.subf %145, %140 : vector<1x96xf32>
      %191 = arith.subf %155, %150 : vector<1x96xf32>
      %192 = arith.mulf %190, %191 : vector<1x96xf32>
      %193 = arith.addf %189, %192 : vector<1x96xf32>
      %194 = arith.subf %193, %186 : vector<1x96xf32>
      %195 = tpu.reciprocal %194 {approx = true} : vector<1x96xf32> -> vector<1x96xf32>
      %196 = arith.mulf %186, %195 : vector<1x96xf32>
      %197 = arith.mulf %117, %194 : vector<1x96xf32>
      %198 = arith.mulf %186, %125 : vector<1x96xf32>
      %199 = arith.cmpf ogt, %197, %198 : vector<1x96xf32>
      %200 = arith.select %199, %127, %196 : vector<1x96xi1>, vector<1x96xf32>
      %201 = vector.extract_strided_slice %17 {offsets = [4, 0], sizes = [1, 96], strides = [1, 1]} : vector<30x96xf32> to vector<1x96xf32>
      %202 = vector.extract_strided_slice %17 {offsets = [9, 0], sizes = [1, 96], strides = [1, 1]} : vector<30x96xf32> to vector<1x96xf32>
      %203 = arith.select %199, %201, %202 : vector<1x96xi1>, vector<1x96xf32>
      %204 = arith.subf %203, %200 : vector<1x96xf32>
      %205 = arith.mulf %204, %204 : vector<1x96xf32>
      %cst_50 = arith.constant 0.000000e+00 : f32
      %206 = vector.broadcast %cst_50 : f32 to vector<1x96xf32>
      %207 = arith.select %29, %205, %206 : vector<1x96xi1>, vector<1x96xf32>
      %208 = vector.extract_strided_slice %17 {offsets = [0, 0], sizes = [1, 96], strides = [1, 1]} : vector<30x96xf32> to vector<1x96xf32>
      %209 = vector.extract_strided_slice %17 {offsets = [5, 0], sizes = [1, 96], strides = [1, 1]} : vector<30x96xf32> to vector<1x96xf32>
      %210 = arith.select %199, %208, %209 : vector<1x96xi1>, vector<1x96xf32>
      %211 = vector.extract_strided_slice %20 {offsets = [0, 0], sizes = [1, 96], strides = [1, 1]} : vector<30x96xf32> to vector<1x96xf32>
      %212 = vector.extract_strided_slice %20 {offsets = [5, 0], sizes = [1, 96], strides = [1, 1]} : vector<30x96xf32> to vector<1x96xf32>
      %213 = arith.select %199, %211, %212 : vector<1x96xi1>, vector<1x96xf32>
      %214 = arith.subf %210, %213 : vector<1x96xf32>
      %215 = vector.extract_strided_slice %17 {offsets = [1, 0], sizes = [1, 96], strides = [1, 1]} : vector<30x96xf32> to vector<1x96xf32>
      %216 = vector.extract_strided_slice %17 {offsets = [6, 0], sizes = [1, 96], strides = [1, 1]} : vector<30x96xf32> to vector<1x96xf32>
      %217 = arith.select %199, %215, %216 : vector<1x96xi1>, vector<1x96xf32>
      %218 = vector.extract_strided_slice %20 {offsets = [1, 0], sizes = [1, 96], strides = [1, 1]} : vector<30x96xf32> to vector<1x96xf32>
      %219 = vector.extract_strided_slice %20 {offsets = [6, 0], sizes = [1, 96], strides = [1, 1]} : vector<30x96xf32> to vector<1x96xf32>
      %220 = arith.select %199, %218, %219 : vector<1x96xi1>, vector<1x96xf32>
      %221 = arith.subf %217, %220 : vector<1x96xf32>
      %222 = vector.extract_strided_slice %17 {offsets = [2, 0], sizes = [1, 96], strides = [1, 1]} : vector<30x96xf32> to vector<1x96xf32>
      %223 = vector.extract_strided_slice %17 {offsets = [7, 0], sizes = [1, 96], strides = [1, 1]} : vector<30x96xf32> to vector<1x96xf32>
      %224 = arith.select %199, %222, %223 : vector<1x96xi1>, vector<1x96xf32>
      %cst_51 = arith.constant 0.000000e+00 : f32
      %225 = vector.broadcast %cst_51 : f32 to vector<1x96xf32>
      %226 = arith.select %29, %224, %225 : vector<1x96xi1>, vector<1x96xf32>
      %227 = math.sqrt %226 : vector<1x96xf32>
      %228 = vector.extract_strided_slice %20 {offsets = [2, 0], sizes = [1, 96], strides = [1, 1]} : vector<30x96xf32> to vector<1x96xf32>
      %229 = vector.extract_strided_slice %20 {offsets = [7, 0], sizes = [1, 96], strides = [1, 1]} : vector<30x96xf32> to vector<1x96xf32>
      %230 = arith.select %199, %228, %229 : vector<1x96xi1>, vector<1x96xf32>
      %cst_52 = arith.constant 0.000000e+00 : f32
      %231 = vector.broadcast %cst_52 : f32 to vector<1x96xf32>
      %232 = arith.select %29, %230, %231 : vector<1x96xi1>, vector<1x96xf32>
      %233 = math.sqrt %232 : vector<1x96xf32>
      %234 = arith.subf %227, %233 : vector<1x96xf32>
      %235 = vector.extract_strided_slice %17 {offsets = [3, 0], sizes = [1, 96], strides = [1, 1]} : vector<30x96xf32> to vector<1x96xf32>
      %236 = vector.extract_strided_slice %17 {offsets = [8, 0], sizes = [1, 96], strides = [1, 1]} : vector<30x96xf32> to vector<1x96xf32>
      %237 = arith.select %199, %235, %236 : vector<1x96xi1>, vector<1x96xf32>
      %cst_53 = arith.constant 0.000000e+00 : f32
      %238 = vector.broadcast %cst_53 : f32 to vector<1x96xf32>
      %239 = arith.select %29, %237, %238 : vector<1x96xi1>, vector<1x96xf32>
      %240 = math.sqrt %239 : vector<1x96xf32>
      %241 = vector.extract_strided_slice %20 {offsets = [3, 0], sizes = [1, 96], strides = [1, 1]} : vector<30x96xf32> to vector<1x96xf32>
      %242 = vector.extract_strided_slice %20 {offsets = [8, 0], sizes = [1, 96], strides = [1, 1]} : vector<30x96xf32> to vector<1x96xf32>
      %243 = arith.select %199, %241, %242 : vector<1x96xi1>, vector<1x96xf32>
      %cst_54 = arith.constant 0.000000e+00 : f32
      %244 = vector.broadcast %cst_54 : f32 to vector<1x96xf32>
      %245 = arith.select %29, %243, %244 : vector<1x96xi1>, vector<1x96xf32>
      %246 = math.sqrt %245 : vector<1x96xf32>
      %247 = arith.subf %240, %246 : vector<1x96xf32>
      %248 = arith.mulf %214, %214 : vector<1x96xf32>
      %249 = arith.mulf %221, %221 : vector<1x96xf32>
      %250 = arith.addf %248, %249 : vector<1x96xf32>
      %251 = arith.mulf %234, %234 : vector<1x96xf32>
      %252 = arith.addf %250, %251 : vector<1x96xf32>
      %253 = arith.mulf %247, %247 : vector<1x96xf32>
      %254 = arith.addf %252, %253 : vector<1x96xf32>
      %cst_55 = arith.constant 0.000000e+00 : f32
      %255 = vector.broadcast %cst_55 : f32 to vector<1x96xf32>
      %256 = arith.select %29, %254, %255 : vector<1x96xi1>, vector<1x96xf32>
      %c0_56 = arith.constant 0 : index
      %c0_57 = arith.constant 0 : index
      %257 = vector.load %arg4[%c0_56, %c0_57] : memref<8x96xf32, #tpu.memory_space<vmem>>, vector<1x96xf32>
      %cst_58 = arith.constant 5.000000e+00 : f32
      %258 = vector.broadcast %cst_58 : f32 to vector<1x96xf32>
      %259 = arith.mulf %258, %256 : vector<1x96xf32>
      %260 = arith.addf %259, %207 : vector<1x96xf32>
      %cst_59 = arith.constant 5.000000e-01 : f32
      %261 = vector.broadcast %cst_59 : f32 to vector<1x96xf32>
      %262 = arith.mulf %261, %58 : vector<1x96xf32>
      %263 = arith.addf %260, %262 : vector<1x96xf32>
      %264 = arith.addf %263, %50 : vector<1x96xf32>
      %265 = arith.addf %257, %264 : vector<1x96xf32>
      %c0_60 = arith.constant 0 : index
      %c0_61 = arith.constant 0 : index
      %266 = vector.load %arg4[%c0_60, %c0_61] : memref<8x96xf32, #tpu.memory_space<vmem>>, vector<1x96xf32>
      tpu.vector_store %arg4[%c0_60, %c0_61], %265 {strides = array<i32>} : memref<8x96xf32, #tpu.memory_space<vmem>>, vector<1x96xf32>,
    } else {
    }
    %c1_i32_5 = arith.constant 1 : i32
    %c1_i32_6 = arith.constant 1 : i32
    %12 = arith.cmpi eq, %arg0, %c1_i32_6 : i32
    %13 = arith.extui %12 : i1 to i32
    %c0_i32_7 = arith.constant 0 : i32
    %14 = arith.cmpi ne, %13, %c0_i32_7 : i32
    scf.if %14 {
      %c0 = arith.constant 0 : index
      %c0_8 = arith.constant 0 : index
      %15 = vector.load %arg4[%c0, %c0_8] : memref<8x96xf32, #tpu.memory_space<vmem>>, vector<1x96xf32>
      %cst = arith.constant dense<0.000000e+00> : vector<1xf32>
      %16 = vector.multi_reduction <add>, %15, %cst [1] : vector<1x96xf32> to vector<1xf32>
      %17 = vector.shape_cast %16 : vector<1xf32> to vector<1x1xf32>
      %cst_9 = arith.constant 5.000000e-01 : f32
      %18 = vector.broadcast %cst_9 : f32 to vector<1x1xf32>
      %19 = arith.mulf %17, %18 : vector<1x1xf32>
      %c0_10 = arith.constant 0 : index
      %c0_11 = arith.constant 0 : index
      %20 = vector.load %arg3[%c0_10, %c0_11] : memref<1x1xf32, #tpu.memory_space<vmem>>, vector<1x1xf32>
      tpu.vector_store %arg3[%c0_10, %c0_11], %19 {strides = array<i32>} : memref<1x1xf32, #tpu.memory_space<vmem>>, vector<1x1xf32>,
    } else {
    }
    return
  }
  func.func @transform_0(%arg0: i32) -> (i32, i32) {
    %c0_i32 = arith.constant 0 : i32
    %c0_i32_0 = arith.constant 0 : i32
    return %arg0, %c0_i32 : i32, i32
  }
  func.func @transform_1(%arg0: i32) -> (i32, i32) {
    %c0_i32 = arith.constant 0 : i32
    %c0_i32_0 = arith.constant 0 : i32
    return %arg0, %c0_i32 : i32, i32
  }
  func.func @transform_2(%arg0: i32) -> (i32, i32) {
    %c0_i32 = arith.constant 0 : i32
    %c0_i32_0 = arith.constant 0 : i32
    %c0_i32_1 = arith.constant 0 : i32
    return %c0_i32, %c0_i32_0 : i32, i32
  }
}

</mosaic_0001>

<bundles_post_ra>
// kernel: tpu_custom_call.1
= control target key start
LH: loop header
LB: loop body
LE: loop exit
PB: predicated region body
PF: predicated region fallthrough
CT: control target
= control target key end

     0   :  { %7 = vsyncpa [#allocation4], 0  ;;  %s713_s9 = smov 0   ;;  %s889_s0 = inlined_call_operand.vmem [shape: f32[98,30], index: 0, kind: input, shape index: {}]   ;;  %s890_s1 = inlined_call_operand.vmem [shape: f32[98,30], index: 1, kind: input, shape index: {}]   ;;  %s891_s2 = inlined_call_operand.hbm [shape: f32[1,1], index: 2, kind: output, shape index: {}]  }
   0x1 LB: > { %s719_s10 = sadd.s32 4294967295, %s694_s9   ;;  %p619_p0 = scmp.ge.s32.totalorder %s694_s9, 1  ;;  %s694_s9 = sphi %s713_s9, %s13_s9  }
   0x2   : > { %p136_p1 = scmp.lt.s32.totalorder %s694_s9, 3 }
   0x4   : > { %p137_p2 = pnand %p619_p0, %p136_p1 }
   0x5   : > { %s166_s11 = smul.u32 (!%p137_p2), 12, %s719_s10  ;;  %p622_p4 = scmp.ne.s32.totalorder (!%p137_p2), %s719_s10, 0 }
   0x6   : > { %140 = sbr.rel (%p137_p2) target bundleno = 405 (0x195), region = 28 }
   0x7   : > { %p171_p3 = scmp.lt.s32.totalorder (!%p137_p2), %s166_s11, 12 }
   0xd   : > { %s897_s11 = smov (!%p171_p3, %s166_s11), 12  ;;  %197 = sbr.rel (%p622_p4) target bundleno = 20 (0x14), region = 32 }
   0xe   : > { %s620_s12 = sshll.u32 %s897_s11, 3  ;;  %vm198_vm0 = vcmask (!%p622_p4), 785408   ;;  %v696_v0 = vmov (!%p622_p4), 0.0  }
   0xf   : > { %s727_s15 = scalar_lea.vmem %s889_s0, %s620_s12  ;;  %s732_s18 = scalar_lea.vmem %s890_s1, %s620_s12  ;;  %199 = vst.msk [vmem:[#allocation2] sm:$0xff] (!%p622_p4), %vm198_vm0, %v696_v0 }
  0x14 PF: > { %s200_s19 = smul.u32 96, %s719_s10 }
  0x16   : > { %p623_p5 = scmp.ge.s32.totalorder %s200_s19, 98 }
  0x17   : > { %v250_v1 = vld [vmem:[%s732_s18] sm:$0xff] (!%p623_p5)  ;;  %v251_v3 = vld [vmem:[%s732_s18 + $0x8] sm:$0xff] (!%p623_p5)  ;;  %v252_v5 = vld [vmem:[%s732_s18 + $0x10] sm:$0xff] (!%p623_p5)  ;;  %vm309_vm1 = vcmask (!%p623_p5), 785408   ;;  %vm313_vm2 = vcmask (!%p623_p5), 783360  }
  0x18   : > { %205 = sbr.rel (%p623_p5) target bundleno = 227 (0xe3), region = 36  ;;  %v206_v2 = vld [vmem:[%s727_s15] sm:$0xff] (!%p623_p5)  ;;  %262 = vxpose.xlu1.b32.start [1/12] (short) (narrow) (!%p623_p5), %v250_v1, 32  ;;  %v207_v4 = vld [vmem:[%s727_s15 + $0x8] sm:$0xff] (!%p623_p5)  ;;  %v208_v6 = vld [vmem:[%s727_s15 + $0x10] sm:$0xff] (!%p623_p5) }
  0x19   : > { %218 = vxpose.xlu0.b32.start [1/12] (short) (narrow) (!%p623_p5), %v206_v2, 32  ;;  %v253_v7 = vld [vmem:[%s732_s18 + $0x18] sm:$0xff] (!%p623_p5)  ;;  %v254_v9 = vld [vmem:[%s732_s18 + $0x20] sm:$0xff] (!%p623_p5)  ;;  %v255_v11 = vld [vmem:[%s732_s18 + $0x28] sm:$0xff] (!%p623_p5) }
  0x1a   : > { %v209_v8 = vld [vmem:[%s727_s15 + $0x18] sm:$0xff] (!%p623_p5)  ;;  %v210_v10 = vld [vmem:[%s727_s15 + $0x20] sm:$0xff] (!%p623_p5)  ;;  %v211_v12 = vld [vmem:[%s727_s15 + $0x28] sm:$0xff] (!%p623_p5) }
  0x1b   : > { %v256_v13 = vld [vmem:[%s732_s18 + $0x30] sm:$0xff] (!%p623_p5)  ;;  %v257_v15 = vld [vmem:[%s732_s18 + $0x38] sm:$0xff] (!%p623_p5)  ;;  %v258_v17 = vld [vmem:[%s732_s18 + $0x40] sm:$0xff] (!%p623_p5) }
  0x1c   : > { %263 = vxpose.xlu1.b32.cont [2/12] (short) (narrow) (!%p623_p5), %v251_v3, 32  ;;  %v212_v14 = vld [vmem:[%s727_s15 + $0x30] sm:$0xff] (!%p623_p5)  ;;  %v213_v16 = vld [vmem:[%s727_s15 + $0x38] sm:$0xff] (!%p623_p5)  ;;  %v214_v18 = vld [vmem:[%s727_s15 + $0x40] sm:$0xff] (!%p623_p5) }
  0x1d   : > { %219 = vxpose.xlu0.b32.cont [2/12] (short) (narrow) (!%p623_p5), %v207_v4, 32  ;;  %v259_v19 = vld [vmem:[%s732_s18 + $0x48] sm:$0xff] (!%p623_p5)  ;;  %v260_v21 = vld [vmem:[%s732_s18 + $0x50] sm:$0xff] (!%p623_p5)  ;;  %v261_v23 = vld [vmem:[%s732_s18 + $0x58] sm:$0xff] (!%p623_p5) }
  0x1e   : > { %v215_v20 = vld [vmem:[%s727_s15 + $0x48] sm:$0xff] (!%p623_p5)  ;;  %v216_v22 = vld [vmem:[%s727_s15 + $0x50] sm:$0xff] (!%p623_p5)  ;;  %v217_v24 = vld [vmem:[%s727_s15 + $0x58] sm:$0xff] (!%p623_p5) }
  0x20   : > { %264 = vxpose.xlu1.b32.cont [3/12] (short) (narrow) %v252_v5, 32 }
  0x21   : > { %220 = vxpose.xlu0.b32.cont [3/12] (short) (narrow) %v208_v6, 32 }
  0x24   : > { %265 = vxpose.xlu1.b32.cont [4/12] (short) (narrow) %v253_v7, 32  ;;  %v294_v7 = vlaneseq }
  0x25   : > { %221 = vxpose.xlu0.b32.cont [4/12] (short) (narrow) %v209_v8, 32 }
  0x28   : > { %266 = vxpose.xlu1.b32.cont [5/12] (short) (narrow) %v254_v9, 32 }
  0x29   : > { %222 = vxpose.xlu0.b32.cont [5/12] (short) (narrow) %v210_v10, 32 }
  0x2c   : > { %267 = vxpose.xlu1.b32.cont [6/12] (short) (narrow) %v255_v11, 32 }
  0x2d   : > { %223 = vxpose.xlu0.b32.cont [6/12] (short) (narrow) %v211_v12, 32 }
  0x30   : > { %268 = vxpose.xlu1.b32.cont [7/12] (short) (narrow) %v256_v13, 32 }
  0x31   : > { %224 = vxpose.xlu0.b32.cont [7/12] (short) (narrow) %v212_v14, 32 }
  0x34   : > { %269 = vxpose.xlu1.b32.cont [8/12] (short) (narrow) %v257_v15, 32 }
  0x35   : > { %225 = vxpose.xlu0.b32.cont [8/12] (short) (narrow) %v213_v16, 32 }
  0x38   : > { %270 = vxpose.xlu1.b32.cont [9/12] (short) (narrow) %v258_v17, 32 }
  0x39   : > { %226 = vxpose.xlu0.b32.cont [9/12] (short) (narrow) %v214_v18, 32 }
  0x3c   : > { %271 = vxpose.xlu1.b32.cont [10/12] (short) (narrow) %v259_v19, 32  ;;  %v295_v19 = vand.u32 127, %v294_v7 }
  0x3d   : > { %227 = vxpose.xlu0.b32.cont [10/12] (short) (narrow) %v215_v20, 32 }
  0x40   : > { %272 = vxpose.xlu1.b32.cont [11/12] (short) (narrow) %v260_v21, 32  ;;  %v296_v21 = vstv %s200_s19 }
  0x41   : > { %228 = vxpose.xlu0.b32.cont [11/12] (short) (narrow) %v216_v22, 32 }
  0x44   : > { %273 = vxpose.xlu1.b32.end [12/12] (short) (narrow) %v261_v23, 32 }
  0x45   : > { %229 = vxpose.xlu0.b32.end [12/12] (short) (narrow) %v217_v24, 32 }
  0x98   : > { %v762_v25 = vpop.trf.xlu1 }
  0x99   : > { %v764_v26 = vpop.trf.xlu0  ;;  %v345_v27 = vmul.f32 0.5, %v762_v25  ;;  %v344_v28 = vmul.f32 0.14285715, %v762_v25  ;;  %vm299_vm4 = vcmp.gt.f32.partialorder %v762_v25, 0.0  ;;  %vm301_vm15 = vcmp.eq.f32.partialorder %v762_v25, 0.0 }
  0x9a   : > { %v338_v30 = vmul.f32 0.5, %v764_v26  ;;  %v337_v32 = vmul.f32 0.14285715, %v764_v26 }
  0x9b   : > { %v347_v29 = vrot.slane %v345_v27, 2 }
  0x9c   : > { %v769_v31 = vpop.trf.xlu1  ;;  %v340_v37 = vrot.slane %v338_v30, 2 }
  0x9d   : > { %v772_v33 = vpop.trf.xlu0  ;;  %v349_v34 = vsub.f32 %v344_v28, %v347_v29  ;;  %v350_v35 = vadd.f32 %v347_v29, %v344_v28  ;;  %v379_v36 = vmul.f32 0.5, %v769_v31 }
  0x9e   : > { %v342_v40 = vsub.f32 %v337_v32, %v340_v37  ;;  %v343_v41 = vadd.f32 %v340_v37, %v337_v32  ;;  %v373_v42 = vmul.f32 0.5, %v772_v33  ;;  %v303_v4 = vsub.f32 %v772_v33, %v769_v31 }
  0x9f   : > { %v359_v38 = vsub.f32 %v350_v35, %v349_v34  ;;  %v381_v39 = vrot.slane %v379_v36, 2 }
  0xa0   : > { %v351_v45 = vmin.f32 %v350_v35, %v343_v41  ;;  %v280_v46 = vpop.trf.xlu1  ;;  %v352_v49 = vmax.f32 %v349_v34, %v342_v40  ;;  %v364_v50 = vsub.f32 %v343_v41, %v342_v40  ;;  %v375_v51 = vrot.slane %v373_v42, 2 }
  0xa1   : > { %v383_v43 = vsub.f32 %v344_v28, %v381_v39  ;;  %v384_v44 = vadd.f32 %v381_v39, %v344_v28  ;;  %v236_v47 = vpop.trf.xlu0  ;;  %v361_v48 = vrot.slane %v359_v38, 1  ;;  %v781_v16 = vmul.f32 %v303_v4, %v303_v4 }
  0xa2   : > { %v353_v53 = vsub.f32 %v351_v45, %v352_v49  ;;  %v366_v54 = vrot.slane %v364_v50, 1  ;;  %v377_v55 = vsub.f32 %v337_v32, %v375_v51  ;;  %v378_v56 = vadd.f32 %v375_v51, %v337_v32 }
  0xa3   : > { %v393_v52 = vsub.f32 %v384_v44, %v383_v43  ;;  %v363_v57 = vmul.f32 %v361_v48, %v359_v38  ;;  %v304_v60 = vsub.f32 %v236_v47, %v280_v46  ;;  %v310_v29 = vsel %vm309_vm1, %v781_v16, 0.0 }
  0xa4   : > { %v354_v58 = vmax.f32 %v353_v53, 0.0  ;;  %v368_v59 = vmul.f32 %v366_v54, %v364_v50  ;;  %v385_v62 = vmin.f32 %v384_v44, %v378_v56  ;;  %v386_v63 = vmax.f32 %v383_v43, %v377_v55  ;;  %v281_v1 = vpop.trf.xlu1 }
  0xa5   : > { %v395_v61 = vrot.slane %v393_v52, 1  ;;  %v398_v0 = vsub.f32 %v378_v56, %v377_v55  ;;  %v237_v2 = vpop.trf.xlu0  ;;  %v307_v14 = vmul.f32 %v304_v60, %v304_v60  ;;  %v786_v32 = vadd.s32 %v296_v21, %v295_v19 }
  0xa6   : > { %v356_v3 = vrot.slane %v354_v58, 1  ;;  %v387_v5 = vsub.f32 %v385_v62, %v386_v63  ;;  %v369_v9 = vadd.f32 %v368_v59, %v363_v57  ;;  %v305_v10 = vsub.f32 %v237_v2, %v281_v1 }
  0xa7   : > { %v400_v6 = vrot.slane %v398_v0, 1  ;;  %v397_v11 = vmul.f32 %v395_v61, %v359_v38  ;;  %v311_v24 = vsel %vm309_vm1, %v307_v14, 0.0  ;;  %v455_v39 = vrot.slane %v764_v26, 2 }
  0xa8   : > { %v778_v8 = vmul.f32 %v356_v3, %v354_v58  ;;  %v388_v12 = vmax.f32 %v387_v5, 0.0  ;;  %v308_v18 = vmul.f32 %v305_v10, %v305_v10  ;;  %v312_v34 = vadd.f32 %v311_v24, %v310_v29 }
  0xa9   : > { %v402_v13 = vmul.f32 %v400_v6, %v364_v50  ;;  %vm298_vm3 = vcmp.lt.s32.totalorder %v786_v32, 98  ;;  %v457_v40 = vrot.slane %v764_v26, 7  ;;  %v471_v41 = vrot.slane %v762_v25, 2 }
  0xaa   : > { %v370_v15 = vsub.f32 %v369_v9, %v778_v8  ;;  %v390_v17 = vrot.slane %v388_v12, 1  ;;  %v314_v30 = vsel %vm313_vm2, %v308_v18, 0.0  ;;  %v473_v43 = vrot.slane %v762_v25, 7  ;;  %vm810_vm6 = vmand %vm299_vm4, %vm298_vm3 }
  0xab   : > { %v403_v23 = vadd.f32 %v402_v13, %v397_v11  ;;  %v315_v36 = vadd.f32 %v314_v30, %v312_v34  ;;  %v488_v44 = vrot.slane %v764_v26, 3  ;;  %v502_v46 = vrot.slane %v762_v25, 3  ;;  %vm302_vm0 = vmand %vm301_vm15, %vm298_vm3 }
  0xac   : > { %v412_v20 = vrot.slane %v370_v15, 3  ;;  %v392_v22 = vmul.f32 %v390_v17, %v354_v58  ;;  %v436_v58 = vrot.slane %v764_v26, 5  ;;  %v440_v59 = vrot.slane %v762_v25, 5 }
  0xad   : > { %v316_v45 = vrot.slane %v315_v36, 4  ;;  %v444_v60 = vrot.slane %v764_v26, 1  ;;  %v446_v63 = vrot.slane %v764_v26, 6  ;;  %v449_v0 = vrot.slane %v762_v25, 1 }
  0xae   : > { %v404_v27 = vsub.f32 %v403_v23, %v392_v22  ;;  %v414_v28 = vmul.f32 %v412_v20, %v392_v22  ;;  %v451_v1 = vrot.slane %v762_v25, 6  ;;  %v424_v17 = vrot.slane %v764_v26, 4 }
  0xaf   : > { %v317_v57 = vadd.f32 %v316_v45, %v315_v36  ;;  %v427_v18 = vrot.slane %v772_v33, 1  ;;  %vm544_vm1 = vcmask 778240  }
  0xb0   : > { %v408_v35 = vrot.slane %v404_v27, 5  ;;  %v416_v38 = vrot.slane %v414_v28, 5  ;;  %646 = vrcp.f32 %v404_v27 }
  0xb1   : > { %648 = vrcp.f32 %v370_v15  ;;  %v318_v4 = vrot.slane %v317_v57, 2 }
  0xb2   : > { %v410_v37 = vmul.f32 %v408_v35, %v778_v8 }
  0xb3   : > { %v319_v12 = vadd.f32 %v318_v4, %v317_v57 }
  0xb4   : > { %vm794_vm5 = vcmp.gt.f32.partialorder %v410_v37, %v416_v38 }
  0xb5   : > { %v459_v47 = vsel %vm794_vm5, %v455_v39, %v457_v40  ;;  %v475_v49 = vsel %vm794_vm5, %v471_v41, %v473_v43  ;;  %v490_v50 = vsel %vm794_vm5, %v488_v44, %v772_v33  ;;  %v504_v54 = vsel %vm794_vm5, %v502_v46, %v769_v31 }
  0xb6   : > { %v461_v48 = vrot.slane %v459_v47, 4  ;;  %v477_v52 = vrot.slane %v475_v49, 4  ;;  %v492_v53 = vrot.slane %v490_v50, 4  ;;  %v506_v56 = vrot.slane %v504_v54, 4 }
  0xb7   : > { %v438_v2 = vsel %vm794_vm5, %v764_v26, %v436_v58  ;;  %v442_v3 = vsel %vm794_vm5, %v762_v25, %v440_v59  ;;  %v448_v5 = vsel %vm794_vm5, %v444_v60, %v446_v63  ;;  %v453_v6 = vsel %vm794_vm5, %v449_v0, %v451_v1 }
  0xb8   : > { %v463_v55 = vsel %vm810_vm6, %v461_v48, 0.0  ;;  %v479_v61 = vsel %vm810_vm6, %v477_v52, 0.0  ;;  %v494_v62 = vsel %vm810_vm6, %v492_v53, 0.0  ;;  %v508_v31 = vsel %vm810_vm6, %v506_v56, 0.0 }
  0xb9   : > { %650 = vrsqrt.f32 %v463_v55  ;;  %v443_v9 = vsub.f32 %v438_v2, %v442_v3  ;;  %v454_v11 = vsub.f32 %v448_v5, %v453_v6  ;;  %vm466_vm7 = vcmp.eq.f32.partialorder %v463_v55, inf }
  0xba   : > { %652 = vrsqrt.f32 %v479_v61  ;;  %v647_v7 = vpop.eup %646  ;;  %v320_v23 = vrot.slane %v319_v12, 1  ;;  %vm468_vm8 = vcmp.eq.f32.partialorder %v463_v55, 0.0  ;;  %v469_v28 = vand.u32 2147483648, %v463_v55 }
  0xbb   : > { %654 = vrsqrt.f32 %v494_v62  ;;  %v649_v10 = vpop.eup %648  ;;  %v406_v13 = vmul.f32 %v647_v7, %v392_v22  ;;  %v517_v19 = vmul.f32 %v443_v9, %v443_v9  ;;  %v518_v21 = vmul.f32 %v454_v11, %v454_v11 }
  0xbc   : > { %656 = vrsqrt.f32 %v508_v31  ;;  %v372_v15 = vmul.f32 %v649_v10, %v778_v8  ;;  %vm482_vm9 = vcmp.eq.f32.partialorder %v479_v61, inf  ;;  %vm484_vm10 = vcmp.eq.f32.partialorder %v479_v61, 0.0 }
  0xbd   : > { %v420_v27 = vrot.slane %v406_v13, 5  ;;  %v485_v34 = vand.u32 2147483648, %v479_v61  ;;  %vm497_vm11 = vcmp.eq.f32.partialorder %v494_v62, inf  ;;  %vm499_vm12 = vcmp.eq.f32.partialorder %v494_v62, 0.0 }
  0xbe   : > { %v500_v37 = vand.u32 2147483648, %v494_v62  ;;  %vm511_vm13 = vcmp.eq.f32.partialorder %v508_v31, inf  ;;  %v514_v43 = vand.u32 2147483648, %v508_v31  ;;  %vm513_vm14 = vcmp.eq.f32.partialorder %v508_v31, 0.0 }
  0xbf   : > { %v422_v39 = vsel %vm794_vm5, %v372_v15, %v420_v27  ;;  %v331_v47 = vsub.f32 %v764_v26, %v762_v25  ;;  %v429_v48 = vsel %vm794_vm5, %v424_v17, %v427_v18  ;;  %v321_v54 = vadd.f32 %v320_v23, %v319_v12  ;;  %v534_v12 = vld [vmem:[#allocation2] sm:$0x1] }
  0xc0   : > { %v430_v50 = vsub.f32 %v429_v48, %v422_v39  ;;  %v519_v56 = vadd.f32 %v518_v21, %v517_v19  ;;  %v324_v26 = vrot.slane %v781_v16, 1 }
  0xc1   : > { %v332_v59 = vmul.f32 %v331_v47, %v331_v47 }
  0xc2   : > { %v431_v60 = vmul.f32 %v430_v50, %v430_v50 }
  0xc3   : > { %v651_v14 = vpop.eup %650 }
  0xc4   : > { %v465_v20 = vmul.f32 %v651_v14, %v463_v55  ;;  %v653_v24 = vpop.eup %652  ;;  %v433_v0 = vrot.slane %v431_v60, 4 }
  0xc5   : > { %v655_v29 = vpop.eup %654  ;;  %v481_v22 = vmul.f32 %v653_v24, %v479_v61 }
  0xc6   : > { %v467_v30 = vsel %vm466_vm7, %v463_v55, %v465_v20  ;;  %v657_v8 = vpop.eup %656  ;;  %v496_v36 = vmul.f32 %v655_v29, %v494_v62  ;;  %v333_v55 = vrot.slane %v781_v16, 5  ;;  %v435_v6 = vsel %vm810_vm6, %v433_v0, 0.0 }
  0xc7   : > { %v470_v35 = vsel %vm468_vm8, %v469_v28, %v467_v30  ;;  %v483_v33 = vsel %vm482_vm9, %v479_v61, %v481_v22  ;;  %v510_v38 = vmul.f32 %v657_v8, %v508_v31 }
  0xc8   : > { %v486_v40 = vsel %vm484_vm10, %v485_v34, %v483_v33  ;;  %v498_v41 = vsel %vm497_vm11, %v494_v62, %v496_v36  ;;  %v335_v42 = vadd.f32 %v333_v55, %v332_v59 }
  0xc9   : > { %v487_v44 = vsub.f32 %v470_v35, %v486_v40  ;;  %v501_v45 = vsel %vm499_vm12, %v500_v37, %v498_v41  ;;  %v512_v46 = vsel %vm511_vm13, %v508_v31, %v510_v38  ;;  %v322_v31 = vsub.f32 %v321_v54, %v781_v16 }
  0xca   : > { %v515_v49 = vsel %vm513_vm14, %v514_v43, %v512_v46  ;;  %v336_v3 = vsel %vm302_vm0, %v335_v42, 0.0 }
  0xcb   : > { %v516_v52 = vsub.f32 %v501_v45, %v515_v49  ;;  %v520_v53 = vmul.f32 %v487_v44, %v487_v44  ;;  %v326_v2 = vsub.f32 %v322_v31, %v324_v26  ;;  %v537_v9 = vmul.f32 0.5, %v336_v3 }
  0xcd   : > { %v522_v57 = vrot.slane %v520_v53, 4  ;;  %v525_v58 = vmul.f32 %v516_v52, %v516_v52  ;;  %v328_v7 = vrot.slane %v326_v2, 4 }
  0xcf   : > { %v524_v61 = vadd.f32 %v522_v57, %v519_v56  ;;  %v527_v62 = vrot.slane %v525_v58, 4  ;;  %v330_v10 = vsel %vm810_vm6, %v328_v7, 0.0 }
  0xd1   : > { %v529_v63 = vadd.f32 %v527_v62, %v524_v61 }
  0xd3   : > { %v531_v1 = vrot.slane %v529_v63, 4 }
  0xd5   : > { %v533_v4 = vsel %vm810_vm6, %v531_v1, 0.0 }
  0xd6   : > { %v535_v5 = vmul.f32 5.0, %v533_v4 }
  0xd8   : > { %v536_v25 = vadd.f32 %v535_v5, %v435_v6 }
  0xda   : > { %v538_v16 = vadd.f32 %v537_v9, %v536_v25 }
  0xdc   : > { %v539_v11 = vadd.f32 %v538_v16, %v330_v10 }
  0xde   : > { %v541_v13 = vrot.slane %v539_v11, 4 }
  0xe0   : > { %v543_v32 = vadd.f32 %v541_v13, %v534_v12 }
  0xe2   : > { %545 = vst.msk [vmem:[#allocation2] sm:$0x1] %vm544_vm1, %v543_v32 }
  0xe3 PF: > { %p624_p6 = scmp.ne.s32.totalorder %s719_s10, 1 }
  0xe4   : > { %vm551_vm2 = vcmask (!%p624_p6), 778240   ;;  %vm556_vm3 = vcmask (!%p624_p6), 0  }
  0xe5   : > { %549 = sbr.rel (%p624_p6) target bundleno = 380 (0x17c), region = 40 }
  0xe9   : > { %v550_v14 = vld [vmem:[#allocation2] sm:$0x1] (!%p624_p6) }
  0xea   : > { %v552_v15 = vsel (!%p624_p6), %vm551_vm2, %v550_v14, 0.0 }
  0xeb   : > { %553 = vadd.xlane.f32.xlu0 (!%p624_p6), %v552_v15 }
 0x178   : > { %v554_v17 = vpop.xlane.xlu0 %553 }
 0x179   : > { %v555_v18 = vmul.f32 0.5, %v554_v17 }
 0x17b   : > { %557 = vst.msk [vmem:[#allocation3] sm:$0x1] %vm556_vm3, %v555_v18 }
 0x17c PF: > { %p633_p7 = scmp.eq.s32.totalorder %s719_s10, 1  ;;  %s697_s20 = smov [#allocation3]  }
 0x17d   : > { %s565_s21 = sshll.u32 %s697_s20, 4  ;;  %s566_s21 = int_to_ptr.vmem [resolvable:$true] %s565_s21 }
 0x17e   : > { %s658_s22 = scalar_lea.vmem %s566_s21, 16  ;;  %s664_s23 = scalar_lea.vmem %s566_s21, 32 }
 0x17f   : > { %p659_p8 = scmp.ne.s32.totalorder %s566_s21, %s658_s22  ;;  %p665_p11 = scmp.lt.s32.totalorder %s566_s21, %s566_s21 }
 0x180   : > { %p666_p12 = scmp.lt.s32.totalorder %s664_s23, %s658_s22 }
 0x181   : > { %p660_p9 = pnand %p659_p8, %p633_p7 }
 0x182   : > { %p667_p13 = por %p666_p12, %p665_p11 }
 0x183   : > { %p661_p10 = pneg %p660_p9 }
 0x185   : > { %p668_p0 = pnand %p667_p13, %p661_p10 }
 0x187   : > { %671 = shalt.err (!%p668_p0)
}
 0x188   : > { %s672_s26 = scalar_lea.hbm %s891_s2, 16 }
 0x189   : > { %p673_p1 = scmp.ne.s32.totalorder %s891_s2, %s672_s26  ;;  %p678_p4 = scmp.lt.u32.totalorder %s672_s26, %s891_s2 }
 0x18b   : > { %p674_p2 = pnand %p673_p1, %p633_p7 }
 0x18d   : > { %p675_p3 = pneg %p674_p2 }
 0x18f   : > { %p680_p5 = pnand %p678_p4, %p675_p3 }
 0x191   : > { %683 = shalt.err (!%p680_p5)
}
 0x192   : > { %630 = dma.vmem_to_hbm [thread:$0]  (%p633_p7), %s566_s21, 16, %s891_s2, [#allocation4]  }
 0x193   : > { %689 = dma.done.wait (%p633_p7), [#allocation4], 16  }
 0x194   : > { %691 = vsyncadd (%p633_p7), [#allocation4], 4294967280 }
 0x195 PF: > { %s13_s9 = sadd.s32 1, %s694_s9  }
 0x196   : > { %p10_p6 = scmp.ge.s32.totalorder %s13_s9, 4  }
 0x198   :  { %12 = sbr.rel (!%p10_p6) target bundleno = 1 (0x1), region = 70 }
 0x19f   :  { %578 = vsyncpa [#allocation4], 1 }
 0x1a0   :  { %580 = vsyncpa [#allocation4 + $0x1], 1 }

</bundles_post_ra>
